<compile_context>
chip_gen: v6e
topology: v6e:2x2x1
jax: 0.10.0
libtpu: 0.0.40
codegen_flags: <defaults>
</compile_context>

<pallas_src>
import functools

import jax
import jax.numpy as jnp
from jax import lax
from jax.experimental import pallas as pl
from jax.experimental.pallas import tpu as pltpu

H1 = 128       # fc1 width (native)
H2 = 64        # fc2 width (logical, as in the PyTorch module)
H2P = 128      # fc2 width padded to a full lane granule
NP = 128       # fused head width padded to a full lane granule
NEG_INF = -1e30


def actor_critic_kernel(s_ref, w1_ref, b1_ref, w2_ref, b2_ref, wh_ref, bh_ref,
                        out_ref, *, action_size):
    x = s_ref[...]                                                     # [B, S] f32

    # fc1 + relu (w1 is tiny; keep f32 to preserve input precision)
    h1 = jnp.dot(x, w1_ref[...], preferred_element_type=jnp.float32) + b1_ref[...]
    h1 = jnp.maximum(h1, 0.0)                                          # [B, 128]

    # fc2 + relu — bf16 MXU inputs, f32 accumulation / elementwise.
    # Hidden width is zero-padded 64 -> 128 lanes; padded lanes stay exactly 0.
    h2 = jnp.dot(h1.astype(jnp.bfloat16), w2_ref[...],
                 preferred_element_type=jnp.float32) + b2_ref[...]
    h2 = jnp.maximum(h2, 0.0)                                          # [B, 128]

    # fused actor+critic head: one matmul. Lanes 0..A-1 = actor logits,
    # lane A = critic value, lanes A+1..127 carry a -1e30 bias baked into bh
    # so their softmax contribution underflows to exactly 0 (no lane mask).
    head = jnp.dot(h2.astype(jnp.bfloat16), wh_ref[...],
                   preferred_element_type=jnp.float32) + bh_ref[...]   # [B, 128]

    col = lax.broadcasted_iota(jnp.int32, head.shape, 1)
    is_value_lane = col == action_size          # the only per-lane compare left

    # numerically-stable softmax over the actor lanes (critic lane excluded).
    logits = jnp.where(is_value_lane, NEG_INF, head)
    m = jnp.max(logits, axis=-1, keepdims=True)
    e = jnp.exp(logits - m)
    denom = jnp.sum(e, axis=-1, keepdims=True)
    probs = e / denom                           # exact divide; kernel is latency-bound

    # single lane-dense output slab: probs in lanes [0, A), value in lane A.
    out_ref[...] = jnp.where(is_value_lane, head, probs)


def init_params(key, state_size, action_size):
    """Deterministic init mimicking nn.Linear default (uniform +/- 1/sqrt(fan_in)).
    Weights are stored already transposed: [in, out]."""
    def linear(k, fan_in, fan_out):
        kw, kb = jax.random.split(k)
        bound = 1.0 / jnp.sqrt(jnp.float32(fan_in))
        w = jax.random.uniform(kw, (fan_in, fan_out), jnp.float32, -bound, bound)
        b = jax.random.uniform(kb, (1, fan_out), jnp.float32, -bound, bound)
        return w, b

    k1, k2, k3, k4 = jax.random.split(key, 4)
    w1, b1 = linear(k1, state_size, H1)
    w2, b2 = linear(k2, H1, H2)
    wa, ba = linear(k3, H2, action_size)
    wc, bc = linear(k4, H2, 1)
    return {"w1": w1, "b1": b1, "w2": w2, "b2": b2,
            "wa": wa, "ba": ba, "wc": wc, "bc": bc}


def fuse_and_pad_params(p, action_size):
    """One-time layout prep (hoist out of the step loop):
    pad fc2 to 128 lanes, fuse+pad the two heads, bake the padding mask into
    the head bias, and cast the large weights to bf16."""
    assert action_size + 1 <= NP, "fused-head layout requires action_size + 1 <= 128"
    w2 = jnp.pad(p["w2"], ((0, 0), (0, H2P - H2))).astype(jnp.bfloat16)   # [128,128] bf16
    b2 = jnp.pad(p["b2"], ((0, 0), (0, H2P - H2)))                        # [1,128] f32
    wh = jnp.concatenate([p["wa"], p["wc"]], axis=1)                      # [64, A+1]
    wh = jnp.pad(wh, ((0, H2P - H2), (0, NP - (action_size + 1)))
                 ).astype(jnp.bfloat16)                                   # [128,128] bf16
    bh = jnp.concatenate([p["ba"], p["bc"]], axis=1)                      # [1, A+1]
    bh = jnp.pad(bh, ((0, 0), (0, NP - (action_size + 1))),
                 constant_values=NEG_INF)        # padded lanes never win the softmax
    return {"w1": p["w1"], "b1": p["b1"], "w2": w2, "b2": b2, "wh": wh, "bh": bh}


@functools.partial(jax.jit, static_argnames=("action_size",))
def actor_critic_forward(state, fused, action_size):
    """state: [B, state_size] f32. fused: output of fuse_and_pad_params."""
    B = state.shape[0]

    vmem = pl.BlockSpec(memory_space=pltpu.MemorySpace.VMEM)
    inputs = (state, fused["w1"], fused["b1"], fused["w2"], fused["b2"],
              fused["wh"], fused["bh"])

    out = pl.pallas_call(
        functools.partial(actor_critic_kernel, action_size=action_size),
        out_shape=jax.ShapeDtypeStruct((B, NP), jnp.float32),
        in_specs=[vmem] * len(inputs),
        out_specs=vmem,
    )(*inputs)

    probs = out[:, :action_size]
    value = out[:, action_size:action_size + 1]
    return probs, value


def reference_forward(state, p):
    """Pure-JAX f32 reference matching the PyTorch module."""
    h1 = jnp.maximum(state @ p["w1"] + p["b1"], 0.0)
    h2 = jnp.maximum(h1 @ p["w2"] + p["b2"], 0.0)
    probs = jax.nn.softmax(h2 @ p["wa"] + p["ba"], axis=-1)
    value = h2 @ p["wc"] + p["bc"]
    return probs, value


if __name__ == "__main__":
    key = jax.random.PRNGKey(0)
    k_params, k_state = jax.random.split(key)

    batch = 2
    state_size = 16
    action_size = 4

    params = init_params(k_params, state_size, action_size)
    fused = fuse_and_pad_params(params, action_size)   # hoisted one-time prep
    state = jax.random.normal(k_state, (batch, state_size), jnp.float32)

    probs, value = actor_critic_forward(state, fused, action_size)
    jax.block_until_ready((probs, value))

    # sanity: shapes match the PyTorch module
    assert probs.shape == (batch, action_size)
    assert value.shape == (batch, 1)
    # exact-reciprocal softmax -> rows sum to 1 at f32 precision
    assert jnp.allclose(jnp.sum(probs, axis=-1), 1.0, atol=1e-5)

    # compare against the pure-f32 reference; tolerance covers the bf16
    # weight storage of fc2 / fused head (f32 accumulation throughout).
    ref_probs, ref_value = reference_forward(state, params)
    assert jnp.allclose(probs, ref_probs, atol=3e-2, rtol=3e-2)
    assert jnp.allclose(value, ref_value, atol=3e-2, rtol=3e-2)

    print("KERNEL_OK")
</pallas_src>

<mosaic_0001>
module attributes {stable_mosaic.version = 11 : i64} {
  func.func @actor_critic_kernel(%arg0: memref<2x16xf32, #tpu.memory_space<vmem>>, %arg1: memref<16x128xf32, #tpu.memory_space<vmem>>, %arg2: memref<1x128xf32, #tpu.memory_space<vmem>>, %arg3: memref<128x128xbf16, #tpu.memory_space<vmem>>, %arg4: memref<1x128xf32, #tpu.memory_space<vmem>>, %arg5: memref<128x128xbf16, #tpu.memory_space<vmem>>, %arg6: memref<1x128xf32, #tpu.memory_space<vmem>>, %arg7: memref<2x128xf32, #tpu.memory_space<vmem>>) attributes {dimension_semantics = [], scalar_prefetch = 0 : i64, scratch_operands = 0 : i64, tpu.core_type = #tpu.core_type<tc>} {
    %c0 = arith.constant 0 : index
    %c0_0 = arith.constant 0 : index
    %0 = vector.load %arg0[%c0, %c0_0] : memref<2x16xf32, #tpu.memory_space<vmem>>, vector<2x16xf32>
    %c0_1 = arith.constant 0 : index
    %c0_2 = arith.constant 0 : index
    %1 = vector.load %arg1[%c0_1, %c0_2] : memref<16x128xf32, #tpu.memory_space<vmem>>, vector<16x128xf32>
    %cst = arith.constant dense<0.000000e+00> : vector<2x128xf32>
    %2 = tpu.matmul %0, %1, %cst {dimension_numbers = #tpu.dot_dimension_numbers<[1], [0], [0], [1], [0, 0, 1, 1], [], []>} : vector<2x16xf32>, vector<16x128xf32>, vector<2x128xf32> -> vector<2x128xf32>
    %c0_3 = arith.constant 0 : index
    %c0_4 = arith.constant 0 : index
    %3 = vector.load %arg2[%c0_3, %c0_4] : memref<1x128xf32, #tpu.memory_space<vmem>>, vector<1x128xf32>
    %4 = vector.broadcast %3 : vector<1x128xf32> to vector<2x128xf32>
    %5 = arith.addf %2, %4 : vector<2x128xf32>
    %cst_5 = arith.constant 0.000000e+00 : f32
    %6 = vector.broadcast %cst_5 : f32 to vector<2x128xf32>
    %7 = arith.maximumf %5, %6 : vector<2x128xf32>
    %8 = arith.truncf %7 : vector<2x128xf32> to vector<2x128xbf16>
    %c0_6 = arith.constant 0 : index
    %c0_7 = arith.constant 0 : index
    %9 = vector.load %arg3[%c0_6, %c0_7] : memref<128x128xbf16, #tpu.memory_space<vmem>>, vector<128x128xbf16>
    %cst_8 = arith.constant dense<0.000000e+00> : vector<2x128xf32>
    %10 = tpu.matmul %8, %9, %cst_8 {dimension_numbers = #tpu.dot_dimension_numbers<[1], [0], [0], [1], [0, 0, 1, 1], [], []>} : vector<2x128xbf16>, vector<128x128xbf16>, vector<2x128xf32> -> vector<2x128xf32>
    %c0_9 = arith.constant 0 : index
    %c0_10 = arith.constant 0 : index
    %11 = vector.load %arg4[%c0_9, %c0_10] : memref<1x128xf32, #tpu.memory_space<vmem>>, vector<1x128xf32>
    %12 = vector.broadcast %11 : vector<1x128xf32> to vector<2x128xf32>
    %13 = arith.addf %10, %12 : vector<2x128xf32>
    %cst_11 = arith.constant 0.000000e+00 : f32
    %14 = vector.broadcast %cst_11 : f32 to vector<2x128xf32>
    %15 = arith.maximumf %13, %14 : vector<2x128xf32>
    %16 = arith.truncf %15 : vector<2x128xf32> to vector<2x128xbf16>
    %c0_12 = arith.constant 0 : index
    %c0_13 = arith.constant 0 : index
    %17 = vector.load %arg5[%c0_12, %c0_13] : memref<128x128xbf16, #tpu.memory_space<vmem>>, vector<128x128xbf16>
    %cst_14 = arith.constant dense<0.000000e+00> : vector<2x128xf32>
    %18 = tpu.matmul %16, %17, %cst_14 {dimension_numbers = #tpu.dot_dimension_numbers<[1], [0], [0], [1], [0, 0, 1, 1], [], []>} : vector<2x128xbf16>, vector<128x128xbf16>, vector<2x128xf32> -> vector<2x128xf32>
    %c0_15 = arith.constant 0 : index
    %c0_16 = arith.constant 0 : index
    %19 = vector.load %arg6[%c0_15, %c0_16] : memref<1x128xf32, #tpu.memory_space<vmem>>, vector<1x128xf32>
    %20 = vector.broadcast %19 : vector<1x128xf32> to vector<2x128xf32>
    %21 = arith.addf %18, %20 : vector<2x128xf32>
    %22 = tpu.iota {dimensions = array<i32: 1>} : vector<2x128xi32>
    %c4_i32 = arith.constant 4 : i32
    %23 = vector.broadcast %c4_i32 : i32 to vector<2x128xi32>
    %24 = arith.cmpi eq, %22, %23 : vector<2x128xi32>
    %cst_17 = arith.constant -1.000000e+30 : f32
    %25 = vector.broadcast %cst_17 : f32 to vector<2x128xf32>
    %26 = arith.select %24, %25, %21 : vector<2x128xi1>, vector<2x128xf32>
    %cst_18 = arith.constant dense<0xFF800000> : vector<2xf32>
    %27 = vector.multi_reduction <maximumf>, %26, %cst_18 [1] : vector<2x128xf32> to vector<2xf32>
    %28 = vector.shape_cast %27 : vector<2xf32> to vector<2x1xf32>
    %29 = vector.broadcast %28 : vector<2x1xf32> to vector<2x128xf32>
    %30 = arith.subf %26, %29 : vector<2x128xf32>
    %31 = math.exp %30 : vector<2x128xf32>
    %cst_19 = arith.constant dense<0.000000e+00> : vector<2xf32>
    %32 = vector.multi_reduction <add>, %31, %cst_19 [1] : vector<2x128xf32> to vector<2xf32>
    %33 = vector.shape_cast %32 : vector<2xf32> to vector<2x1xf32>
    %34 = vector.broadcast %33 : vector<2x1xf32> to vector<2x128xf32>
    %35 = arith.divf %31, %34 : vector<2x128xf32>
    %36 = arith.select %24, %21, %35 : vector<2x128xi1>, vector<2x128xf32>
    %c0_20 = arith.constant 0 : index
    %c0_21 = arith.constant 0 : index
    %37 = vector.load %arg7[%c0_20, %c0_21] : memref<2x128xf32, #tpu.memory_space<vmem>>, vector<2x128xf32>
    tpu.vector_store %arg7[%c0_20, %c0_21], %36 {strides = array<i32>} : memref<2x128xf32, #tpu.memory_space<vmem>>, vector<2x128xf32>,
    return
  }
}

</mosaic_0001>

<bundles_post_ra>
// kernel: actor_critic_forward.1
= control target key start
LH: loop header
LB: loop body
LE: loop exit
PB: predicated region body
PF: predicated region fallthrough
CT: control target
= control target key end

     0   :  { %12 = vsyncpa [#allocation3], 0  ;;  %s719_s0 = inlined_call_operand.hbm [shape: f32[2,16], index: 0, kind: input, shape index: {}]   ;;  %s720_s1 = inlined_call_operand.hbm [shape: f32[16,128], index: 1, kind: input, shape index: {}]   ;;  %s721_s2 = inlined_call_operand.vmem [shape: f32[1,128], index: 2, kind: input, shape index: {}]   ;;  %s722_s3 = inlined_call_operand.hbm [shape: bf16[128,128], index: 3, kind: input, shape index: {}]   ;;  %s723_s4 = inlined_call_operand.vmem [shape: f32[1,128], index: 4, kind: input, shape index: {}]   ;;  %s724_s5 = inlined_call_operand.hbm [shape: bf16[128,128], index: 5, kind: input, shape index: {}]   ;;  %s725_s6 = inlined_call_operand.vmem [shape: f32[1,128], index: 6, kind: input, shape index: {}]   ;;  %s726_s7 = inlined_call_operand.vmem [shape: f32[2,128], index: 7, kind: output, shape index: {}]  }
   0x1   :  { %13 = vsyncpa [#allocation5], 0 }
   0x2   :  { %14 = vsyncpa [#allocation8], 0  ;;  %s619_s24 = smov [#allocation4]  }
   0x3   :  { %s30_s25 = sshll.u32 %s619_s24, 4  ;;  %s31_s25 = int_to_ptr.vmem [resolvable:$true] %s30_s25 }
   0x4   :  { %s541_s26 = scalar_lea.vmem %s31_s25, 256  ;;  %p546_p1 = scmp.lt.s32.totalorder %s31_s25, %s31_s25 }
   0x5   :  { %p542_p0 = scmp.ne.s32.totalorder %s31_s25, %s541_s26  ;;  %p547_p2 = scmp.lt.s32.totalorder %s541_s26, %s541_s26 }
   0x7   :  { %p548_p3 = por %p547_p2, %p546_p1 }
   0x9   :  { %p549_p4 = pnand %p548_p3, %p542_p0 }
   0xb   :  { %552 = shalt.err (!%p549_p4)
}
   0xc   :  { %s620_s27 = smov 128   ;;  %s621_s28 = smov 8  }
   0xd   :  { %36 = dma.hbm_to_vmem [thread:$0]  %s720_s1, 256, %s31_s25, [#allocation5], %s620_s27, %s620_s27, %s621_s28  }
   0xe   :  { %s622_s8 = smov [#allocation2]   ;;  %s623_s10 = smov [#allocation6]  }
   0xf   :  { %s21_s9 = sshll.u32 %s622_s8, 4  ;;  %s44_s11 = sshll.u32 %s623_s10, 4  ;;  %s22_s9 = int_to_ptr.vmem [resolvable:$true] %s21_s9  ;;  %s45_s11 = int_to_ptr.vmem [resolvable:$true] %s44_s11 }
  0x10   :  { %s561_s12 = scalar_lea.vmem %s22_s9, 32  ;;  %p566_p6 = scmp.lt.s32.totalorder %s22_s9, %s22_s9 }
  0x11   :  { %p562_p5 = scmp.ne.s32.totalorder %s22_s9, %s561_s12  ;;  %p567_p7 = scmp.lt.s32.totalorder %s561_s12, %s561_s12 }
  0x13   :  { %p568_p8 = por %p567_p7, %p566_p6 }
  0x15   :  { %p569_p9 = pnand %p568_p8, %p562_p5 }
  0x17   :  { %572 = shalt.err (!%p569_p9)
}
  0x18   :  { %24 = dma.hbm_to_vmem [thread:$0]  %s719_s0, 32, %s22_s9, [#allocation3]  }
  0x19   :  { %s581_s15 = scalar_lea.vmem %s45_s11, 1024  ;;  %p586_p11 = scmp.lt.s32.totalorder %s45_s11, %s45_s11 }
  0x1a   :  { %p582_p10 = scmp.ne.s32.totalorder %s45_s11, %s581_s15  ;;  %p587_p12 = scmp.lt.s32.totalorder %s581_s15, %s581_s15 }
  0x1c   :  { %p588_p13 = por %p587_p12, %p586_p11 }
  0x1e   :  { %p589_p0 = pnand %p588_p13, %p582_p10 }
  0x20   :  { %592 = shalt.err (!%p589_p0)
}
  0x21   :  { %s624_s1 = smov 64   ;;  %s625_s16 = smov 4  }
  0x22   :  { %50 = dma.hbm_to_vmem [thread:$0]  %s722_s3, 1024, %s45_s11, [#allocation5], %s624_s1, %s624_s1, %s625_s16  }
  0x23   :  { %s626_s19 = smov [#allocation7]  }
  0x24   :  { %s58_s20 = sshll.u32 %s626_s19, 4  ;;  %s59_s20 = int_to_ptr.vmem [resolvable:$true] %s58_s20 }
  0x25   :  { %s601_s21 = scalar_lea.vmem %s59_s20, 1024  ;;  %p606_p2 = scmp.lt.s32.totalorder %s59_s20, %s59_s20 }
  0x26   :  { %p602_p1 = scmp.ne.s32.totalorder %s59_s20, %s601_s21  ;;  %p607_p3 = scmp.lt.s32.totalorder %s601_s21, %s601_s21 }
  0x28   :  { %p608_p4 = por %p607_p3, %p606_p2 }
  0x2a   :  { %p609_p5 = pnand %p608_p4, %p602_p1 }
  0x2c   :  { %612 = shalt.err (!%p609_p5)
}
  0x2d   :  { %64 = dma.hbm_to_vmem [thread:$0]  %s724_s5, 1024, %s59_s20, [#allocation8], %s624_s1, %s624_s1, %s625_s16  }
  0x2e   :  { %613 = dma.done.wait [#allocation3], 32  }
  0x2f   :  { %614 = vsyncadd [#allocation3], 4294967264 }
  0x30   :  { %615 = dma.done.wait [#allocation5], 1280  }
  0x31   :  { %616 = vsyncadd [#allocation5], 4294966016 }
  0x32   :  { %617 = dma.done.wait [#allocation8], 1024  }
  0x33   :  { %618 = vsyncadd [#allocation8], 4294966272  ;;  %v627_v0 = vmov 0.0   ;;  %vm628_vm0 = vmmov 0   ;;  %v82_v1 = vld [vmem:[#allocation4 + $0x8] sm:$0xff]  ;;  %v81_v2 = vld [vmem:[#allocation4] sm:$0xff]  ;;  %v390_v34 = vlaneseq }
  0x34   :  { %456 = vmatprep.subr.mxu0 %v627_v0  ;;  %460 = vmatprep.mubr.msk.f32.mxu0 %vm628_vm0, %v627_v0  ;;  %v80_v3 = vld [vmem:[#allocation2] sm:$0x3]  ;;  %vm90_vm1 = vcmask 130048   ;;  %v513_v4 = vld [vmem:[#allocation6 + $0x38] sm:$0xff]   ;;  %v514_v5 = vld [vmem:[#allocation6 + $0x30] sm:$0xff]   ;;  %vm394_vm3 = vcmask 1041408  }
  0x35   :  { %463 = vmatprep.subr.bf16.mxu1 %v627_v0  ;;  %479 = vmatprep.mubr.msk.bf16.mxu1 %vm628_vm0, %v627_v0  ;;  %v515_v6 = vld [vmem:[#allocation6 + $0x28] sm:$0xff]   ;;  %v516_v7 = vld [vmem:[#allocation6 + $0x20] sm:$0xff]   ;;  %v517_v8 = vld [vmem:[#allocation6 + $0x18] sm:$0xff]   ;;  %v391_v35 = vand.u32 127, %v390_v34 }
  0x36   :  { %457 = vmatpush3.msra.mxu0 %v82_v1  ;;  %464 = vmatpush3.bf16.msra.mxu1 %v513_v4  ;;  %v518_v9 = vld [vmem:[#allocation6 + $0x10] sm:$0xff]   ;;  %v519_v10 = vld [vmem:[#allocation6 + $0x8] sm:$0xff]   ;;  %v520_v11 = vld [vmem:[#allocation6] sm:$0xff]  }
  0x37   :  { %458 = vmatprep.subr.mxu0 %v627_v0  ;;  %465 = vmatprep.subr.bf16.mxu1 %v627_v0  ;;  %v521_v12 = vld [vmem:[#allocation7 + $0x38] sm:$0xff]   ;;  %v522_v13 = vld [vmem:[#allocation7 + $0x30] sm:$0xff]   ;;  %v523_v14 = vld [vmem:[#allocation7 + $0x28] sm:$0xff]   ;;  %vm392_vm2 = vcmp.eq.s32.totalorder %v391_v35, 4 }
  0x38   :  { %459 = vmatpush3.msra.mxu0 %v81_v2  ;;  %v524_v15 = vld [vmem:[#allocation7 + $0x20] sm:$0xff]   ;;  %v525_v16 = vld [vmem:[#allocation7 + $0x18] sm:$0xff]   ;;  %v526_v17 = vld [vmem:[#allocation7 + $0x10] sm:$0xff]  }
  0x39   :  { %461 = vmatmul.mubr.msk.f32.vlgmr.msra.gmra.mxu0 %vm90_vm1, %v80_v3  ;;  %483 = vmatprep.subr.bf16.mxu0 %v627_v0  ;;  %v415_v18 = vld [vmem:[%s721_s2] ss:$0 sm:$0xff]  ;;  %v528_v25 = vld [vmem:[#allocation7] sm:$0xff]  }
  0x3a   :  { %499 = vmatprep.mubr.msk.bf16.mxu0 %vm628_vm0, %v627_v0  ;;  %466 = vmatpush3.bf16.msra.mxu1 %v514_v5  ;;  %v527_v24 = vld [vmem:[#allocation7 + $0x8] sm:$0xff]  }
  0x3b   :  { %467 = vmatprep.subr.bf16.mxu1 %v627_v0  ;;  %484 = vmatpush3.bf16.msra.mxu0 %v521_v12  ;;  %v417_v26 = vld [vmem:[%s723_s4] ss:$0 sm:$0xff] }
  0x3c   :  { %485 = vmatprep.subr.bf16.mxu0 %v627_v0  ;;  %v426_v36 = vld [vmem:[%s725_s6] ss:$0 sm:$0xff] }
  0x3e   :  { %468 = vmatpush3.bf16.msra.mxu1 %v515_v6 }
  0x3f   :  { %469 = vmatprep.subr.bf16.mxu1 %v627_v0  ;;  %486 = vmatpush3.bf16.msra.mxu0 %v522_v13 }
  0x40   :  { %487 = vmatprep.subr.bf16.mxu0 %v627_v0 }
  0x42   :  { %470 = vmatpush3.bf16.msra.mxu1 %v516_v7 }
  0x43   :  { %471 = vmatprep.subr.bf16.mxu1 %v627_v0  ;;  %488 = vmatpush3.bf16.msra.mxu0 %v523_v14 }
  0x44   :  { %489 = vmatprep.subr.bf16.mxu0 %v627_v0 }
  0x46   :  { %472 = vmatpush3.bf16.msra.mxu1 %v517_v8 }
  0x47   :  { %473 = vmatprep.subr.bf16.mxu1 %v627_v0  ;;  %490 = vmatpush3.bf16.msra.mxu0 %v524_v15 }
  0x48   :  { %491 = vmatprep.subr.bf16.mxu0 %v627_v0 }
  0x4a   :  { %474 = vmatpush3.bf16.msra.mxu1 %v518_v9 }
  0x4b   :  { %475 = vmatprep.subr.bf16.mxu1 %v627_v0  ;;  %492 = vmatpush3.bf16.msra.mxu0 %v525_v16 }
  0x4c   :  { %493 = vmatprep.subr.bf16.mxu0 %v627_v0 }
  0x4e   :  { %476 = vmatpush3.bf16.msra.mxu1 %v519_v10 }
  0x4f   :  { %477 = vmatprep.subr.bf16.mxu1 %v627_v0  ;;  %494 = vmatpush3.bf16.msra.mxu0 %v526_v17 }
  0x50   :  { %495 = vmatprep.subr.bf16.mxu0 %v627_v0 }
  0x52   :  { %478 = vmatpush3.bf16.msra.mxu1 %v520_v11 }
  0x53   :  { %496 = vmatpush3.bf16.msra.mxu0 %v527_v24 }
  0x54   :  { %497 = vmatprep.subr.bf16.mxu0 %v627_v0 }
  0x57   :  { %498 = vmatpush3.bf16.msra.mxu0 %v528_v25 }
  0xf9   :  { %v160_v19 = vpop.f32.mrf.mxu0 }
  0xfa   :  { %v161_v20 = vadd.f32 %v415_v18, %v160_v19 }
  0xfb   :  { %v462_v21 = vpop.f32.mrf.mxu0 }
  0xfc   :  { %v164_v22 = vmax.f32 %v161_v20, 0.0 }
  0xfe   :  { %v165_v23 = vpack.c.bf16 %v164_v22, %v164_v22 }
 0x100   :  { %480 = vmatmul.mubr.bf16.vlgmr.msra.gmra.mxu1 %v165_v23 }
 0x1c0   :  { %v271_v27 = vpop.f32.mrf.mxu1 }
 0x1c1   :  { %v272_v28 = vadd.f32 %v417_v26, %v271_v27 }
 0x1c2   :  { %v481_v29 = vpop.f32.mrf.mxu1 }
 0x1c3   :  { %v277_v30 = vmax.f32 %v272_v28, 0.0 }
 0x1c4   :  { %v274_v31 = vpop.f32.mrf.mxu1 }
 0x1c5   :  { %v278_v32 = vpack.c.bf16 %v277_v30, %v277_v30 }
 0x1c6   :  { %v482_v33 = vpop.f32.mrf.mxu1 }
 0x1c7   :  { %500 = vmatmul.mubr.bf16.vlgmr.msra.gmra.mxu0 %v278_v32 }
 0x287   :  { %v384_v37 = vpop.f32.mrf.mxu0 }
 0x288   :  { %v385_v38 = vadd.f32 %v426_v36, %v384_v37 }
 0x289   :  { %v501_v39 = vpop.f32.mrf.mxu0 }
 0x28a   :  { %v393_v40 = vsel %vm392_vm2, -1e+30, %v385_v38 }
 0x28b   :  { %v387_v41 = vpop.f32.mrf.mxu0  ;;  %v395_v42 = vsel %vm394_vm3, %v393_v40, -inf }
 0x28c   :  { %396 = vmax.xlane.f32.xlu0 %v395_v42 }
 0x28d   :  { %v502_v43 = vpop.f32.mrf.mxu0 }
 0x315   :  { %v397_v44 = vpop.xlane.xlu0 %396 }
 0x316   :  { %v398_v45 = vsub.f32 %v393_v40, %v397_v44 }
 0x318   :  { %v399_v46 = vmul.f32 1.442695, %v398_v45 }
 0x31a   :  { %529 = vpow2.f32 %v399_v46 }
 0x327   :  { %v530_v47 = vpop.eup %529 }
 0x328   :  { %v401_v48 = vsel %vm394_vm3, %v530_v47, 0.0 }
 0x329   :  { %402 = vadd.xlane.f32.xlu0 %v401_v48 }
 0x3b2   :  { %v403_v49 = vpop.xlane.xlu0 %402 }
 0x3b3   :  { %531 = vrcp.f32 %v403_v49 }
 0x3c0   :  { %v532_v50 = vpop.eup %531 }
 0x3c1   :  { %v405_v51 = vmul.f32 %v532_v50, %v530_v47 }
 0x3c3   :  { %v406_v52 = vsel %vm392_vm2, %v385_v38, %v405_v51 }
 0x3c4   :  { %407 = vst [vmem:[%s726_s7] sm:$0x3] %v406_v52 }
 0x3c5   :  { %412 = vsyncpa [#allocation3], 1 }
 0x3c6   :  { %413 = vsyncpa [#allocation5], 1 }
 0x3c7   :  { %414 = vsyncpa [#allocation8], 1 }

</bundles_post_ra>
